<compile_context>
chip_gen: v7x
topology: tpu7x:2x2x1
jax: 0.10.0
libtpu: 0.0.40
codegen_flags: <defaults>
</compile_context>

<pallas_src>
import jax
import jax.numpy as jnp
from jax.experimental import pallas as pl
from jax.experimental.pallas import tpu as pltpu


def _make_gcn_kernel(num_layers, D, compute_dtype):
    hd = D // num_layers

    def kernel(adj_ref, x_ref, *rest):
        # rest = (wt_0, b_0, ..., wt_{L-1}, b_{L-1}, wlin_t, blin, out_ref)
        out_ref = rest[-1]
        wrefs = rest[:-1]

        adj = adj_ref[...]                           # (Bt, N, N) compute dtype
        x3 = x_ref[...]                              # (Bt, N, D) f32
        Bt, N, _ = adj.shape

        # denom = adj.sum(2, keepdims=True) + 1, in f32; reciprocal runs on the
        # EUP slot (approx rcp ~2^-12 rel err, well inside the bf16 tolerance).
        denom = jnp.sum(adj.astype(jnp.float32), axis=2, keepdims=True) + 1.0
        inv_denom = pl.reciprocal(denom, approx=True)            # (Bt, N, 1)

        def propagate(block3):
            # (adj + I) @ block == adj @ block + block : the identity term is a
            # cheap add, no materialized (N, N) eye / a_hat.
            p = jnp.einsum("bij,bjw->biw", adj, block3.astype(compute_dtype),
                           preferred_element_type=jnp.float32)
            p = p + block3
            return p.reshape(Bt * N, block3.shape[-1]).astype(compute_dtype)

        x2_c = x3.reshape(Bt * N, D).astype(compute_dtype)

        # Propagated blocks of the growing concat [x, g_0, g_1, ...]; each block
        # is propagated exactly once and reused by every later layer.
        # TODO(synk): for large num_layers stage these in a single VMEM scratch
        # (Bt*N, D + (L-1)*hd) and read static slices to bound vreg pressure.
        p_blocks = [propagate(x3)]
        widths = [D]

        # Output projection folded into the layer loop: seed with x@Wlin + blin,
        # add each g_l @ Wlin[l*hd:(l+1)*hd] as soon as g_l is produced.
        wlin_ref = wrefs[2 * num_layers]             # (D, D) compute dtype
        blin = wrefs[2 * num_layers + 1][...]        # (1, D) f32
        out_acc = jnp.dot(x2_c, wlin_ref[...],
                          preferred_element_type=jnp.float32) + blin

        for l in range(num_layers):
            w_ref = wrefs[2 * l]                     # (D + l*hd, hd) ref
            b = wrefs[2 * l + 1][...]                # (1, hd) f32

            # axw = concat(p_blocks) @ W_l + 2*b, as a sum of row-block matmuls
            # against static slices taken at the Ref (no full-weight value
            # load, no concatenate).
            acc = None
            off = 0
            for pb, w in zip(p_blocks, widths):
                part = jnp.dot(pb, w_ref[off:off + w, :],
                               preferred_element_type=jnp.float32)
                acc = part if acc is None else acc + part
                off += w
            axw2 = acc + 2.0 * b                     # (Bt*N, hd) f32

            g3 = jnp.maximum(axw2.reshape(Bt, N, hd) * inv_denom, 0.0)
            g2_c = g3.reshape(Bt * N, hd).astype(compute_dtype)

            out_acc = out_acc + jnp.dot(g2_c, wlin_ref[l * hd:(l + 1) * hd, :],
                                        preferred_element_type=jnp.float32)

            if l + 1 < num_layers:
                p_blocks.append(propagate(g3))
                widths.append(hd)

        # TODO(synk): when D % 128 != 0, present a lane-dense (Bt, 1, N*D)
        # output slab instead of the masked (Bt, N, D) store; needs a
        # lane-dim-changing reshape Mosaic may not lower on all versions.
        out_ref[...] = out_acc.reshape(Bt, N, D)

    return kernel


def _step_vmem_bytes(bt, N, D, num_layers, adj_bytes):
    """Rough per-grid-step VMEM footprint (bytes) of the pipelined kernel."""
    hd = D // num_layers
    rows = bt * N
    return (2 * bt * N * N * adj_bytes            # adj tile, double-buffered
            + 2 * bt * N * D * 4                  # x tile (f32), double-buffered
            + 2 * bt * N * D * 4                  # out tile (f32), double-buffered
            + rows * (D + num_layers * hd) * 4    # propagated blocks + out_acc
            + 4 * rows * D * 4)                   # working-set headroom


def _pick_batch_tile(B, N, D, num_layers, adj_bytes, vmem_cap, target_rows=256):
    """MXU/VMEM-aware batch tile.

    Prefers (1) >= 2 grid steps so the "parallel" axis can shard across v7x's
    two TensorCores, (2) Bt*N rows that fill an MXU pass, (3) more grid steps,
    subject to the per-step footprint fitting in ~half of this generation's
    VMEM (64 MiB per TC on v7x vs 128 MiB on v5e/v6e).
    """
    budget = vmem_cap // 2
    cands = [bt for bt in range(1, B + 1)
             if B % bt == 0
             and _step_vmem_bytes(bt, N, D, num_layers, adj_bytes) <= budget]
    if not cands:
        cands = [1]

    def score(bt):
        grid = B // bt
        rows = bt * N
        return (1 if grid >= 2 else 0,    # keep both v7x TensorCores busy
                min(rows, target_rows),   # fill MXU rows
                -bt)                      # then prefer more grid steps
    return max(cands, key=score)


def graph_conv_layer(adj, x, params, *, num_layers, batch_tile=None,
                     use_bf16=True):
    """params = (list of (Wt, b) per GCN sub-layer, (Wlin_t, blin))."""
    B, N, D = x.shape
    assert adj.shape == (B, N, N)
    assert D % num_layers == 0, "mem_dim must be divisible by num_layers"

    compute_dtype = jnp.bfloat16 if use_bf16 else jnp.float32
    adj_bytes = 2 if use_bf16 else 4

    # Size tiles per generation (v7x: 64 MiB VMEM/TC vs 128 MiB on v5e/v6e).
    try:
        vmem_cap = int(getattr(pltpu.get_tpu_info(), "vmem_capacity_bytes",
                               64 * 1024 * 1024))
    except Exception:
        vmem_cap = 64 * 1024 * 1024

    if batch_tile is None:
        batch_tile = _pick_batch_tile(B, N, D, num_layers, adj_bytes, vmem_cap)
    assert B % batch_tile == 0
    Bt = batch_tile

    layer_params, (wlin_t, blin) = params

    # Pre-cast MXU operands once in the wrapper (halves adj HBM->VMEM bytes and
    # avoids re-casting weights every grid step); biases stay f32.
    adj_c = adj.astype(compute_dtype)
    weight_args = []
    for wt, b in layer_params:
        weight_args += [wt.astype(compute_dtype), b.astype(jnp.float32)]
    weight_args += [wlin_t.astype(compute_dtype), blin.astype(jnp.float32)]

    def full_spec(arr):
        # Grid-invariant (weights/biases): whole array, constant block index.
        # TODO(synk): pipeline_mode=pl.Buffered(1) would halve their VMEM
        # footprint (constant index_map); omitted for portability.
        ndim = arr.ndim
        return pl.BlockSpec(arr.shape, lambda i, _nd=ndim: (0,) * _nd)

    weight_specs = [full_spec(w) for w in weight_args]

    # Explicit scoped-VMEM limit derived from the real per-step footprint so
    # larger adj tiles aren't rejected by the default 16/32 MiB scoped limit.
    weight_bytes = sum(int(w.size) * w.dtype.itemsize for w in weight_args)
    step_bytes = _step_vmem_bytes(Bt, N, D, num_layers, adj_bytes)
    vmem_limit = int(min(max(32 * 2**20, 2 * (step_bytes + 2 * weight_bytes)),
                         max(vmem_cap - 2 * 2**20, 16 * 2**20)))

    kernel = _make_gcn_kernel(num_layers, D, compute_dtype)

    out = pl.pallas_call(
        kernel,
        out_shape=jax.ShapeDtypeStruct((B, N, D), jnp.float32),
        grid_spec=pltpu.PrefetchScalarGridSpec(
            num_scalar_prefetch=0,
            grid=(B // Bt,),
            in_specs=[
                pl.BlockSpec((Bt, N, N), lambda i: (i, 0, 0)),
                pl.BlockSpec((Bt, N, D), lambda i: (i, 0, 0)),
            ] + weight_specs,
            out_specs=pl.BlockSpec((Bt, N, D), lambda i: (i, 0, 0)),
        ),
        compiler_params=pltpu.CompilerParams(
            dimension_semantics=("parallel",),
            vmem_limit_bytes=vmem_limit),
    )(adj_c, x, *weight_args)
    return out


def init_params(key, dim, num_layers):
    head_dim = dim // num_layers
    keys = jax.random.split(key, 2 * num_layers + 2)
    layer_params = []
    for l in range(num_layers):
        in_dim = dim + head_dim * l
        scale = 1.0 / jnp.sqrt(in_dim)
        # stored transposed: (in_dim, head_dim)
        wt = jax.random.uniform(keys[2 * l], (in_dim, head_dim),
                                jnp.float32, -scale, scale)
        b = jax.random.uniform(keys[2 * l + 1], (1, head_dim),
                               jnp.float32, -scale, scale)
        layer_params.append((wt, b))
    scale = 1.0 / jnp.sqrt(dim)
    wlin_t = jax.random.uniform(keys[-2], (dim, dim), jnp.float32,
                                -scale, scale)
    blin = jax.random.uniform(keys[-1], (1, dim), jnp.float32,
                              -scale, scale)
    return layer_params, (wlin_t, blin)


def reference_forward(adj, x, params, num_layers):
    """Pure-JAX f32 reference mirroring the PyTorch forward."""
    layer_params, (wlin_t, blin) = params
    denom = jnp.sum(adj, axis=2, keepdims=True) + 1.0
    outputs = x
    cache_list = [x]
    output_list = []
    for l in range(num_layers):
        wt, b = layer_params[l]
        ax = jnp.einsum("bij,bjd->bid", adj, outputs)
        axw = ax @ wt + b + (outputs @ wt + b)
        axw = axw / denom
        g = jax.nn.relu(axw)
        cache_list.append(g)
        outputs = jnp.concatenate(cache_list, axis=2)
        output_list.append(g)
    gcn_out = jnp.concatenate(output_list, axis=2) + x
    return gcn_out @ wlin_t + blin


if __name__ == "__main__":
    B, N, DIM, NUM_LAYERS = 2, 8, 32, 2

    key = jax.random.PRNGKey(0)
    k_adj, k_x, k_p = jax.random.split(key, 3)

    # adjacency: non-negative, like a (soft) dependency graph
    adj = jax.random.uniform(k_adj, (B, N, N), jnp.float32)
    x = jax.random.normal(k_x, (B, N, DIM), jnp.float32)

    params = init_params(k_p, DIM, NUM_LAYERS)

    out = graph_conv_layer(adj, x, params, num_layers=NUM_LAYERS)
    out = jax.block_until_ready(out)

    ref = reference_forward(adj, x, params, NUM_LAYERS)
    assert out.shape == (B, N, DIM)
    # bf16 MXU operands with f32 accumulation vs the pure-f32 reference:
    # tolerance relaxed (as flagged in the perf review).
    assert jnp.allclose(out, ref, atol=3e-2, rtol=3e-2), \
        float(jnp.max(jnp.abs(out - ref)))

    print("KERNEL_OK")
</pallas_src>

<mosaic_0001>
module attributes {stable_mosaic.version = 11 : i64} {
  func.func @kernel(%arg0: i32, %arg1: memref<1x8x8xbf16, #tpu.memory_space<vmem>>, %arg2: memref<1x8x32xf32, #tpu.memory_space<vmem>>, %arg3: memref<32x16xbf16, #tpu.memory_space<vmem>>, %arg4: memref<1x16xf32, #tpu.memory_space<vmem>>, %arg5: memref<48x16xbf16, #tpu.memory_space<vmem>>, %arg6: memref<1x16xf32, #tpu.memory_space<vmem>>, %arg7: memref<32x32xbf16, #tpu.memory_space<vmem>>, %arg8: memref<1x32xf32, #tpu.memory_space<vmem>>, %arg9: memref<1x8x32xf32, #tpu.memory_space<vmem>>) attributes {dimension_semantics = [#tpu.dimension_semantics<parallel>], iteration_bounds = array<i64: 2>, scalar_prefetch = 0 : i64, scratch_operands = 0 : i64, tpu.core_type = #tpu.core_type<tc>, window_params = [{transform_indices = @transform_0, window_bounds = array<i64: 1, 8, 8>}, {transform_indices = @transform_1, window_bounds = array<i64: 1, 8, 32>}, {pipeline_mode = #tpu.pipeline_mode<synchronous>, transform_indices = @transform_2, window_bounds = array<i64: 32, 16>}, {pipeline_mode = #tpu.pipeline_mode<synchronous>, transform_indices = @transform_3, window_bounds = array<i64: 1, 16>}, {pipeline_mode = #tpu.pipeline_mode<synchronous>, transform_indices = @transform_4, window_bounds = array<i64: 48, 16>}, {pipeline_mode = #tpu.pipeline_mode<synchronous>, transform_indices = @transform_5, window_bounds = array<i64: 1, 16>}, {pipeline_mode = #tpu.pipeline_mode<synchronous>, transform_indices = @transform_6, window_bounds = array<i64: 32, 32>}, {pipeline_mode = #tpu.pipeline_mode<synchronous>, transform_indices = @transform_7, window_bounds = array<i64: 1, 32>}, {transform_indices = @transform_8, window_bounds = array<i64: 1, 8, 32>}]} {
    %c0 = arith.constant 0 : index
    %c0_0 = arith.constant 0 : index
    %c0_1 = arith.constant 0 : index
    %0 = vector.load %arg1[%c0, %c0_0, %c0_1] : memref<1x8x8xbf16, #tpu.memory_space<vmem>>, vector<1x8x8xbf16>
    %c0_2 = arith.constant 0 : index
    %c0_3 = arith.constant 0 : index
    %c0_4 = arith.constant 0 : index
    %1 = vector.load %arg2[%c0_2, %c0_3, %c0_4] : memref<1x8x32xf32, #tpu.memory_space<vmem>>, vector<1x8x32xf32>
    %2 = arith.extf %0 : vector<1x8x8xbf16> to vector<1x8x8xf32>
    %cst = arith.constant dense<0.000000e+00> : vector<1x8xf32>
    %3 = vector.multi_reduction <add>, %2, %cst [2] : vector<1x8x8xf32> to vector<1x8xf32>
    %4 = vector.shape_cast %3 : vector<1x8xf32> to vector<1x8x1xf32>
    %cst_5 = arith.constant 1.000000e+00 : f32
    %5 = vector.broadcast %cst_5 : f32 to vector<1x8x1xf32>
    %6 = arith.addf %4, %5 : vector<1x8x1xf32>
    %7 = tpu.reciprocal %6 {approx = true} : vector<1x8x1xf32> -> vector<1x8x1xf32>
    %8 = vector.shape_cast %1 : vector<1x8x32xf32> to vector<8x32xf32>
    %9 = arith.truncf %8 : vector<8x32xf32> to vector<8x32xbf16>
    %10 = arith.truncf %1 : vector<1x8x32xf32> to vector<1x8x32xbf16>
    "tpu.trace_start"() <{level = 10 : i32, message = "bij,bjw->biw"}> : () -> ()
    %cst_6 = arith.constant dense<0.000000e+00> : vector<1x8x32xf32>
    %11 = tpu.matmul %0, %10, %cst_6 {dimension_numbers = #tpu.dot_dimension_numbers<[2], [1], [1], [2], [0, 0, 0, 1, 1, 2], [0], [0]>} : vector<1x8x8xbf16>, vector<1x8x32xbf16>, vector<1x8x32xf32> -> vector<1x8x32xf32>
    "tpu.trace_stop"() : () -> ()
    %12 = arith.addf %11, %1 : vector<1x8x32xf32>
    %13 = vector.shape_cast %12 : vector<1x8x32xf32> to vector<8x32xf32>
    %14 = arith.truncf %13 : vector<8x32xf32> to vector<8x32xbf16>
    %c0_7 = arith.constant 0 : index
    %c0_8 = arith.constant 0 : index
    %15 = vector.load %arg8[%c0_7, %c0_8] : memref<1x32xf32, #tpu.memory_space<vmem>>, vector<1x32xf32>
    %c0_9 = arith.constant 0 : index
    %c0_10 = arith.constant 0 : index
    %16 = vector.load %arg7[%c0_9, %c0_10] : memref<32x32xbf16, #tpu.memory_space<vmem>>, vector<32x32xbf16>
    %cst_11 = arith.constant dense<0.000000e+00> : vector<8x32xf32>
    %17 = tpu.matmul %9, %16, %cst_11 {dimension_numbers = #tpu.dot_dimension_numbers<[1], [0], [0], [1], [0, 0, 1, 1], [], []>} : vector<8x32xbf16>, vector<32x32xbf16>, vector<8x32xf32> -> vector<8x32xf32>
    %18 = vector.broadcast %15 : vector<1x32xf32> to vector<8x32xf32>
    %19 = arith.addf %17, %18 : vector<8x32xf32>
    %c0_12 = arith.constant 0 : index
    %c0_13 = arith.constant 0 : index
    %20 = vector.load %arg4[%c0_12, %c0_13] : memref<1x16xf32, #tpu.memory_space<vmem>>, vector<1x16xf32>
    %c0_14 = arith.constant 0 : index
    %c0_15 = arith.constant 0 : index
    %21 = vector.load %arg3[%c0_14, %c0_15] : memref<32x16xbf16, #tpu.memory_space<vmem>>, vector<32x16xbf16>
    %cst_16 = arith.constant dense<0.000000e+00> : vector<8x16xf32>
    %22 = tpu.matmul %14, %21, %cst_16 {dimension_numbers = #tpu.dot_dimension_numbers<[1], [0], [0], [1], [0, 0, 1, 1], [], []>} : vector<8x32xbf16>, vector<32x16xbf16>, vector<8x16xf32> -> vector<8x16xf32>
    %cst_17 = arith.constant 2.000000e+00 : f32
    %23 = vector.broadcast %cst_17 : f32 to vector<1x16xf32>
    %24 = arith.mulf %23, %20 : vector<1x16xf32>
    %25 = vector.broadcast %24 : vector<1x16xf32> to vector<8x16xf32>
    %26 = arith.addf %22, %25 : vector<8x16xf32>
    %27 = vector.shape_cast %26 : vector<8x16xf32> to vector<1x8x16xf32>
    %28 = vector.broadcast %7 : vector<1x8x1xf32> to vector<1x8x16xf32>
    %29 = arith.mulf %27, %28 : vector<1x8x16xf32>
    %cst_18 = arith.constant 0.000000e+00 : f32
    %30 = vector.broadcast %cst_18 : f32 to vector<1x8x16xf32>
    %31 = arith.maximumf %29, %30 : vector<1x8x16xf32>
    %32 = vector.shape_cast %31 : vector<1x8x16xf32> to vector<8x16xf32>
    %33 = arith.truncf %32 : vector<8x16xf32> to vector<8x16xbf16>
    %c0_19 = arith.constant 0 : index
    %c0_20 = arith.constant 0 : index
    %34 = vector.load %arg7[%c0_19, %c0_20] : memref<32x32xbf16, #tpu.memory_space<vmem>>, vector<16x32xbf16>
    %cst_21 = arith.constant dense<0.000000e+00> : vector<8x32xf32>
    %35 = tpu.matmul %33, %34, %cst_21 {dimension_numbers = #tpu.dot_dimension_numbers<[1], [0], [0], [1], [0, 0, 1, 1], [], []>} : vector<8x16xbf16>, vector<16x32xbf16>, vector<8x32xf32> -> vector<8x32xf32>
    %36 = arith.addf %19, %35 : vector<8x32xf32>
    %37 = arith.truncf %31 : vector<1x8x16xf32> to vector<1x8x16xbf16>
    "tpu.trace_start"() <{level = 10 : i32, message = "bij,bjw->biw"}> : () -> ()
    %cst_22 = arith.constant dense<0.000000e+00> : vector<1x8x16xf32>
    %38 = tpu.matmul %0, %37, %cst_22 {dimension_numbers = #tpu.dot_dimension_numbers<[2], [1], [1], [2], [0, 0, 0, 1, 1, 2], [0], [0]>} : vector<1x8x8xbf16>, vector<1x8x16xbf16>, vector<1x8x16xf32> -> vector<1x8x16xf32>
    "tpu.trace_stop"() : () -> ()
    %39 = arith.addf %38, %31 : vector<1x8x16xf32>
    %40 = vector.shape_cast %39 : vector<1x8x16xf32> to vector<8x16xf32>
    %41 = arith.truncf %40 : vector<8x16xf32> to vector<8x16xbf16>
    %c0_23 = arith.constant 0 : index
    %c0_24 = arith.constant 0 : index
    %42 = vector.load %arg6[%c0_23, %c0_24] : memref<1x16xf32, #tpu.memory_space<vmem>>, vector<1x16xf32>
    %c0_25 = arith.constant 0 : index
    %c0_26 = arith.constant 0 : index
    %43 = vector.load %arg5[%c0_25, %c0_26] : memref<48x16xbf16, #tpu.memory_space<vmem>>, vector<32x16xbf16>
    %cst_27 = arith.constant dense<0.000000e+00> : vector<8x16xf32>
    %44 = tpu.matmul %14, %43, %cst_27 {dimension_numbers = #tpu.dot_dimension_numbers<[1], [0], [0], [1], [0, 0, 1, 1], [], []>} : vector<8x32xbf16>, vector<32x16xbf16>, vector<8x16xf32> -> vector<8x16xf32>
    %c32 = arith.constant 32 : index
    %c0_28 = arith.constant 0 : index
    %45 = vector.load %arg5[%c32, %c0_28] : memref<48x16xbf16, #tpu.memory_space<vmem>>, vector<16x16xbf16>
    %cst_29 = arith.constant dense<0.000000e+00> : vector<8x16xf32>
    %46 = tpu.matmul %41, %45, %cst_29 {dimension_numbers = #tpu.dot_dimension_numbers<[1], [0], [0], [1], [0, 0, 1, 1], [], []>} : vector<8x16xbf16>, vector<16x16xbf16>, vector<8x16xf32> -> vector<8x16xf32>
    %47 = arith.addf %44, %46 : vector<8x16xf32>
    %cst_30 = arith.constant 2.000000e+00 : f32
    %48 = vector.broadcast %cst_30 : f32 to vector<1x16xf32>
    %49 = arith.mulf %48, %42 : vector<1x16xf32>
    %50 = vector.broadcast %49 : vector<1x16xf32> to vector<8x16xf32>
    %51 = arith.addf %47, %50 : vector<8x16xf32>
    %52 = vector.shape_cast %51 : vector<8x16xf32> to vector<1x8x16xf32>
    %53 = vector.broadcast %7 : vector<1x8x1xf32> to vector<1x8x16xf32>
    %54 = arith.mulf %52, %53 : vector<1x8x16xf32>
    %cst_31 = arith.constant 0.000000e+00 : f32
    %55 = vector.broadcast %cst_31 : f32 to vector<1x8x16xf32>
    %56 = arith.maximumf %54, %55 : vector<1x8x16xf32>
    %57 = vector.shape_cast %56 : vector<1x8x16xf32> to vector<8x16xf32>
    %58 = arith.truncf %57 : vector<8x16xf32> to vector<8x16xbf16>
    %c16 = arith.constant 16 : index
    %c0_32 = arith.constant 0 : index
    %59 = vector.load %arg7[%c16, %c0_32] : memref<32x32xbf16, #tpu.memory_space<vmem>>, vector<16x32xbf16>
    %cst_33 = arith.constant dense<0.000000e+00> : vector<8x32xf32>
    %60 = tpu.matmul %58, %59, %cst_33 {dimension_numbers = #tpu.dot_dimension_numbers<[1], [0], [0], [1], [0, 0, 1, 1], [], []>} : vector<8x16xbf16>, vector<16x32xbf16>, vector<8x32xf32> -> vector<8x32xf32>
    %61 = arith.addf %36, %60 : vector<8x32xf32>
    %62 = vector.shape_cast %61 : vector<8x32xf32> to vector<1x8x32xf32>
    %c0_34 = arith.constant 0 : index
    %c0_35 = arith.constant 0 : index
    %c0_36 = arith.constant 0 : index
    %63 = vector.load %arg9[%c0_34, %c0_35, %c0_36] : memref<1x8x32xf32, #tpu.memory_space<vmem>>, vector<1x8x32xf32>
    tpu.vector_store %arg9[%c0_34, %c0_35, %c0_36], %62 {strides = array<i32>} : memref<1x8x32xf32, #tpu.memory_space<vmem>>, vector<1x8x32xf32>,
    return
  }
  func.func @transform_0(%arg0: i32) -> (i32, i32, i32) {
    %c0_i32 = arith.constant 0 : i32
    %c0_i32_0 = arith.constant 0 : i32
    %c0_i32_1 = arith.constant 0 : i32
    return %arg0, %c0_i32, %c0_i32_0 : i32, i32, i32
  }
  func.func @transform_1(%arg0: i32) -> (i32, i32, i32) {
    %c0_i32 = arith.constant 0 : i32
    %c0_i32_0 = arith.constant 0 : i32
    %c0_i32_1 = arith.constant 0 : i32
    return %arg0, %c0_i32, %c0_i32_0 : i32, i32, i32
  }
  func.func @transform_2(%arg0: i32) -> (i32, i32) {
    %c0_i32 = arith.constant 0 : i32
    %c0_i32_0 = arith.constant 0 : i32
    %c0_i32_1 = arith.constant 0 : i32
    return %c0_i32, %c0_i32_0 : i32, i32
  }
  func.func @transform_3(%arg0: i32) -> (i32, i32) {
    %c0_i32 = arith.constant 0 : i32
    %c0_i32_0 = arith.constant 0 : i32
    %c0_i32_1 = arith.constant 0 : i32
    return %c0_i32, %c0_i32_0 : i32, i32
  }
  func.func @transform_4(%arg0: i32) -> (i32, i32) {
    %c0_i32 = arith.constant 0 : i32
    %c0_i32_0 = arith.constant 0 : i32
    %c0_i32_1 = arith.constant 0 : i32
    return %c0_i32, %c0_i32_0 : i32, i32
  }
  func.func @transform_5(%arg0: i32) -> (i32, i32) {
    %c0_i32 = arith.constant 0 : i32
    %c0_i32_0 = arith.constant 0 : i32
    %c0_i32_1 = arith.constant 0 : i32
    return %c0_i32, %c0_i32_0 : i32, i32
  }
  func.func @transform_6(%arg0: i32) -> (i32, i32) {
    %c0_i32 = arith.constant 0 : i32
    %c0_i32_0 = arith.constant 0 : i32
    %c0_i32_1 = arith.constant 0 : i32
    return %c0_i32, %c0_i32_0 : i32, i32
  }
  func.func @transform_7(%arg0: i32) -> (i32, i32) {
    %c0_i32 = arith.constant 0 : i32
    %c0_i32_0 = arith.constant 0 : i32
    %c0_i32_1 = arith.constant 0 : i32
    return %c0_i32, %c0_i32_0 : i32, i32
  }
  func.func @transform_8(%arg0: i32) -> (i32, i32, i32) {
    %c0_i32 = arith.constant 0 : i32
    %c0_i32_0 = arith.constant 0 : i32
    %c0_i32_1 = arith.constant 0 : i32
    return %arg0, %c0_i32, %c0_i32_0 : i32, i32, i32
  }
}

</mosaic_0001>

<bundles_post_ra>
// kernel: tpu_custom_call.1
= control target key start
LH: loop header
LB: loop body
LE: loop exit
PB: predicated region body
PF: predicated region fallthrough
CT: control target
= control target key end

     0   :  { %13 = vsyncpa [#allocation3], 0  ;;  %s1319_s0 = inlined_call_operand.vmem [shape: bf16[2,8,8], index: 0, kind: input, shape index: {}]   ;;  %s1320_s1 = inlined_call_operand.vmem [shape: f32[2,8,32], index: 1, kind: input, shape index: {}]   ;;  %s1321_s2 = inlined_call_operand.vmem [shape: bf16[32,16], index: 2, kind: input, shape index: {}]   ;;  %s1322_s3 = inlined_call_operand.vmem [shape: f32[1,16], index: 3, kind: input, shape index: {}]   ;;  %s1323_s4 = inlined_call_operand.vmem [shape: bf16[48,16], index: 4, kind: input, shape index: {}]   ;;  %s1324_s5 = inlined_call_operand.vmem [shape: f32[1,16], index: 5, kind: input, shape index: {}]   ;;  %s1325_s6 = inlined_call_operand.vmem [shape: bf16[32,32], index: 6, kind: input, shape index: {}]   ;;  %s1326_s7 = inlined_call_operand.vmem [shape: f32[1,32], index: 7, kind: input, shape index: {}]   ;;  %s1327_s8 = inlined_call_operand.hbm [shape: f32[2,8,32], index: 8, kind: output, shape index: {}]  }
   0x1   :  { %15 = vsyncpa [#allocation3 + $0x1], 0  ;;  %s1141_s27 = smov 0   ;;  %s1143_s28 = smov 0  }
   0x2   :  { %s1145_s29 = smov 0   ;;  %s1147_s30 = smov 0  }
   0x3 LB: > { %s1162_s9 = sadd.s32 4294967295, %s1091_s30   ;;  %s866_s10 = sadd.s32 4294967294, %s1091_s30   ;;  %s1091_s30 = sphi %s1147_s30, %s1333_s30   ;;  %s1087_s29 = sphi %s1145_s29, %s1332_s29   ;;  %s1083_s28 = sphi %s1143_s28, %s1331_s28   ;;  %s1079_s27 = sphi %s1141_s27, %s1330_s27  }
   0x4   : > { %s1166_s11 = sadd.s32 1, %s1091_s30   ;;  %s206_s12 = sadd.s32 1, %s1087_s29 }
   0x5   : > { %s203_s13 = ssub.s32 %s1091_s30, %s1166_s11  ;;  %p216_p0 = scmp.ne.s32.totalorder %s1087_s29, %s1083_s28 }
   0x6   : > { %p204_p1 = scmp.eq.s32.totalorder %s203_s13, 0  ;;  %p217_p2 = scmp.eq.s32.totalorder %s1162_s9, 1 }
   0x7   : > { %p222_p3 = scmp.ne.s32.totalorder %s1083_s28, %s1079_s27  ;;  %p223_p4 = scmp.eq.s32.totalorder %s866_s10, 1 }
   0x8   : > { %s1177_s14 = scalar_select %p204_p1, %s1087_s29, %s206_s12  }
   0x9   : > { %p1179_p5 = por %p217_p2, %p216_p0  ;;  %p1183_p6 = por %p223_p4, %p222_p3 }
   0xa   : > { %p869_p7 = scmp.ge.s32.totalorder %s1091_s30, 1  ;;  %p273_p8 = scmp.lt.s32.totalorder %s1091_s30, 3 }
   0xc   : > { %p274_p9 = pnand %p869_p7, %p273_p8 }
   0xd   : > { %p310_p10 = scmp.lt.s32.totalorder (!%p274_p9), %s1162_s9, 1  ;;  %v1093_v0 = vmov (!%p274_p9), 0.0   ;;  %vm1094_vm0 = vmmov (!%p274_p9), 0   ;;  %vm332_vm1 = vcmask (!%p274_p9), 1043456   ;;  %vm322_vm2 = vcmask (!%p274_p9), 64512   ;;  %v1018_v5 = vld [vmem:[%s1321_s2] sm:$0xff] (!%p274_p9)  }
   0xe   : > { %277 = sbr.rel (%p274_p9) target bundleno = 1138 (0x472), region = 52  ;;  %914 = vmatprep.subr.bf16.mxu0 (!%p274_p9), %v1093_v0  ;;  %916 = vmatprep.mubr.msk.bf16.mxu0 (!%p274_p9), %vm1094_vm0, %v1093_v0  ;;  %v1019_v6 = vld [vmem:[%s1321_s2 + $0x8] sm:$0xff] (!%p274_p9)   ;;  %v1020_v9 = vld [vmem:[%s1325_s6] sm:$0xff] (!%p274_p9)   ;;  %vm400_vm3 = vcmask (!%p274_p9), 261120   ;;  %v450_v19 = vlaneseq (!%p274_p9)  ;;  %vm521_vm4 = vcmask (!%p274_p9), 130048   ;;  %v1025_v38 = vld [vmem:[%s1323_s4 + $0x10] sm:$0xff] (!%p274_p9)  }
   0xf   : > { %920 = vmatprep.subr.bf16.mxu1 (!%p274_p9), %v1093_v0  ;;  %924 = vmatprep.mubr.msk.bf16.mxu1 (!%p274_p9), %vm1094_vm0, %v1093_v0  ;;  %v1021_v10 = vld [vmem:[%s1325_s6 + $0x8] sm:$0xff] (!%p274_p9)   ;;  %v1022_v17 = vld [vmem:[%s1325_s6] sm:$0xff] (!%p274_p9)   ;;  %s892_s26 = sshll.u32 (!%p274_p9), %s1162_s9, 7  ;;  %s1095_s20 = smov (!%p274_p9), [#allocation2]  }
  0x10   : > { %921 = vmatpush3.bf16.msra.mxu1 (!%p274_p9), %v1020_v9  ;;  %v451_v21 = vshrl.u32 (!%p274_p9), %v450_v19, 7  ;;  %v443_v22 = vld [vmem:[%s1322_s3] sm:$0x1] (!%p274_p9)  ;;  %v1024_v37 = vld [vmem:[%s1323_s4 + $0x8] sm:$0xff] (!%p274_p9)   ;;  %s1033_s21 = sshll.u32 (!%p274_p9), %s1095_s20, 4  ;;  %s1034_s21 = int_to_ptr.vmem [resolvable:$false] %s1033_s21 }
  0x11   : > { %922 = vmatprep.subr.bf16.mxu1 (!%p274_p9), %v1093_v0  ;;  %v448_v23 = vmul.f32 (!%p274_p9), 2.0, %v443_v22  ;;  %v1023_v36 = vld [vmem:[%s1323_s4] sm:$0xff] (!%p274_p9)   ;;  %v1026_v49 = vld [vmem:[%s1325_s6 + $0x8] sm:$0xff] (!%p274_p9)  }
  0x12   : > { %v452_v24 = vsub.s32 (!%p274_p9), 0, %v451_v21  ;;  %v609_v50 = vld [vmem:[%s1324_s5] sm:$0x1] (!%p274_p9) }
  0x13   : > { %v717_v51 = vmul.f32 (!%p274_p9), 2.0, %v609_v50  ;;  %v874_v62 = vld [vmem:[%s1326_s7] ss:$0 sm:$0xff] (!%p274_p9) }
  0x14   : > { %923 = vmatpush3.bf16.msra.mxu1 (!%p274_p9), %v1021_v10  ;;  %v453_v25 = vrot.slane (!%p274_p9), %v448_v23, %v452_v24 }
  0x15   : > { %s311_s17 = scalar_select %p310_p10, %s1162_s9, 1  ;;  %936 = vmatprep.subr.bf16.mxu1 %v1093_v0  ;;  %v722_v52 = vrot.slane %v717_v51, %v452_v24 }
  0x17   : > { %s872_s18 = sshll.u32 %s311_s17, 3  ;;  %s871_s19 = sshll.u32 %s311_s17, 2 }
  0x18   : > { %s317_s22 = scalar_lea.vmem %s1320_s1, %s872_s18  ;;  %s313_s25 = scalar_lea.vmem %s1319_s0, %s871_s19 }
  0x19   : > { %v320_v1 = vld [vmem:[%s317_s22] sm:$0xff]  ;;  %s307_s22 = sand.u32 1, %s1083_s28   ;;  %s1276_s18 = scalar_lea.hbm %s1327_s8, %s892_s26 }
  0x1a   : > { %v328_v2 = vpack.c.bf16 %v320_v1, %v320_v1  ;;  %v319_v4 = vld [vmem:[%s313_s25] sm:$0xf]  ;;  %s870_s23 = sshll.u32 %s307_s22, 3  ;;  %s782_s9 = scalar_lea.sflag [#allocation3], %s307_s22 }
  0x1b   : > { %v321_v7 = vunpack.c.l.bf16 %v319_v4  ;;  %s309_s10 = scalar_lea.vmem [#allocation2], %s870_s23  ;;  %s1035_s23 = scalar_lea.vmem %s1034_s21, 256 }
  0x1c   : > { %v334_v3 = vsel %vm332_vm1, %v328_v2, 0  ;;  %925 = vmatmul.mubr.msk.bf16.vlgmr.msra.gmra.mrb[0].mxu1 %vm400_vm3, %v328_v2  ;;  %s795_s12 = sshll.u32 %s309_s10, 4  ;;  %s1278_s12 = int_to_ptr.vmem [resolvable:$true] %s795_s12 }
  0x1d   : > { %915 = vmatpush3.bf16.msra.mxu0 %v334_v3  ;;  %v323_v8 = vsel %vm322_vm2, %v321_v7, 0.0  ;;  %938 = vmatprep.mubr.msk.bf16.mxu1 %vm1094_vm0, %v1093_v0  ;;  %s1029_s19 = scalar_lea.vmem %s1278_s12, 128  ;;  %p1036_p0 = scmp.lt.s32.totalorder %s1278_s12, %s1034_s21 }
  0x1e   : > { %928 = vmatprep.subr.bf16.mxu0 %v1093_v0  ;;  %324 = vadd.xlane.f32.xlu0 %v323_v8  ;;  %p1030_p11 = scmp.ne.s32.totalorder %s1278_s12, %s1029_s19  ;;  %p1037_p1 = scmp.lt.s32.totalorder %s1035_s23, %s1029_s19 }
  0x1f   : > { %937 = vmatpush3.bf16.msra.mxu1 %v1022_v17 }
  0x20   : > { %917 = vmatmul.mubr.msk.bf16.vlgmr.msra.gmra.mrb[0].mxu0 %vm322_vm2, %v319_v4  ;;  %948 = vmatprep.subr.bf16.mxu1 %v1093_v0  ;;  %p1031_p12 = pnand %p1030_p11, %p1179_p5  ;;  %p1038_p2 = por %p1037_p1, %p1036_p0 }
  0x21   : > { %929 = vmatpush3.bf16.msra.mxu0 %v1018_v5  ;;  %932 = vmatprep.mubr.msk.bf16.mxu0 %vm1094_vm0, %v1093_v0 }
  0x22   : > { %930 = vmatprep.subr.bf16.mxu0 %v1093_v0  ;;  %p1032_p13 = pneg %p1031_p12 }
  0x24   : > { %p1039_p3 = pnand %p1038_p2, %p1032_p13 }
  0x25   : > { %931 = vmatpush3.bf16.msra.mxu0 %v1019_v6 }
  0x26   : > { %942 = vmatprep.subr.bf16.mxu0 %v1093_v0 }
  0xab   : > { %v325_v18 = vpop.xlane.xlu0 %324 }
  0xac   : > { %v326_v20 = vadd.f32 1.0, %v325_v18 }
  0xae   : > { %1027 = vrcp.f32 %v326_v20 }
  0xb8   : > { %v1028_v26 = vpop.eup %1027 }
  0xf3   : > { %v370_v11 = vpop.f32.mrb[0].mxu0 }
  0xf4   : > { %v371_v12 = vadd.f32 %v370_v11, %v320_v1  ;;  %v918_v13 = vpop.f32.mrb[1].mxu0 }
  0xf5   : > { %v373_v14 = vpop.f32.mrb[2].mxu0 }
  0xf6   : > { %v376_v15 = vpack.c.bf16 %v371_v12, %v371_v12  ;;  %v919_v16 = vpop.f32.mrb[3].mxu0 }
  0xf8   : > { %933 = vmatmul.mubr.msk.bf16.vlgmr.msra.gmra.mrb[4].mxu0 %vm400_vm3, %v376_v15 }
  0xf9   : > { %944 = vmatprep.mubr.msk.bf16.mxu0 %vm1094_vm0, %v1093_v0 }
 0x1cb   : > { %v504_v27 = vpop.f32.mrb[4].mxu0 }
 0x1cc   : > { %v505_v28 = vadd.f32 %v504_v27, %v453_v25  ;;  %v934_v29 = vpop.f32.mrb[5].mxu0 }
 0x1cd   : > { %v507_v30 = vpop.f32.mrb[6].mxu0 }
 0x1ce   : > { %v510_v31 = vmul.f32 %v1028_v26, %v505_v28  ;;  %v935_v32 = vpop.f32.mrb[7].mxu0 }
 0x1d0   : > { %v511_v33 = vmax.f32 %v510_v31, 0.0 }
 0x1d2   : > { %v512_v34 = vpack.c.bf16 %v511_v33, %v511_v33 }
 0x1d4   : > { %939 = vmatmul.mubr.msk.bf16.vlgmr.msra.gmra.mrb[0].mxu1 %vm521_vm4, %v512_v34  ;;  %v566_v35 = vsel %vm332_vm1, %v512_v34, 0 }
 0x1d5   : > { %943 = vmatpush3.bf16.msra.mxu0 %v566_v35  ;;  %950 = vmatprep.mubr.msk.bf16.mxu1 %vm1094_vm0, %v1093_v0 }
 0x1d6   : > { %954 = vmatprep.subr.bf16.mxu0 %v1093_v0  ;;  %949 = vmatpush3.bf16.msra.mxu1 %v1025_v38 }
 0x1d7   : > { %962 = vmatprep.subr.bf16.mxu1 %v1093_v0 }
 0x1d8   : > { %945 = vmatmul.mubr.msk.bf16.vlgmr.msra.gmra.mrb[8].mxu0 %vm322_vm2, %v319_v4 }
 0x1d9   : > { %955 = vmatpush3.bf16.msra.mxu0 %v1023_v36  ;;  %958 = vmatprep.mubr.msk.bf16.mxu0 %vm1094_vm0, %v1093_v0 }
 0x1da   : > { %956 = vmatprep.subr.bf16.mxu0 %v1093_v0 }
 0x1dd   : > { %957 = vmatpush3.bf16.msra.mxu0 %v1024_v37 }
 0x1e0   : > { %959 = vmatmul.mubr.msk.bf16.vlgmr.msra.gmra.mrb[12].mxu0 %vm400_vm3, %v376_v15 }
 0x2ab   : > { %v602_v39 = vpop.f32.mrb[8].mxu0 }
 0x2ac   : > { %v603_v40 = vadd.f32 %v602_v39, %v511_v33  ;;  %v946_v41 = vpop.f32.mrb[9].mxu0 }
 0x2ad   : > { %v605_v42 = vpop.f32.mrb[10].mxu0 }
 0x2ae   : > { %v608_v43 = vpack.c.bf16 %v603_v40, %v603_v40  ;;  %v947_v44 = vpop.f32.mrb[11].mxu0 }
 0x2b0   : > { %951 = vmatmul.mubr.msk.bf16.vlgmr.msra.gmra.mrb[4].mxu1 %vm521_vm4, %v608_v43 }
 0x2b1   : > { %964 = vmatprep.mubr.msk.bf16.mxu1 %vm1094_vm0, %v1093_v0  ;;  %963 = vmatpush3.bf16.msra.mxu1 %v1026_v49 }
 0x2b3   : > { %v711_v45 = vpop.f32.mrb[12].mxu0 }
 0x2b4   : > { %v960_v46 = vpop.f32.mrb[13].mxu0 }
 0x2b5   : > { %v714_v47 = vpop.f32.mrb[14].mxu0 }
 0x2b6   : > { %v961_v48 = vpop.f32.mrb[15].mxu0 }
 0x383   : > { %v659_v53 = vpop.f32.mrb[4].mxu1 }
 0x384   : > { %v712_v54 = vadd.f32 %v711_v45, %v659_v53  ;;  %v952_v55 = vpop.f32.mrb[5].mxu1 }
 0x385   : > { %v662_v56 = vpop.f32.mrb[6].mxu1 }
 0x386   : > { %v724_v57 = vadd.f32 %v722_v52, %v712_v54  ;;  %v953_v58 = vpop.f32.mrb[7].mxu1 }
 0x388   : > { %v725_v59 = vmul.f32 %v1028_v26, %v724_v57 }
 0x38a   : > { %v726_v60 = vmax.f32 %v725_v59, 0.0 }
 0x38c   : > { %v727_v61 = vpack.c.bf16 %v726_v60, %v726_v60 }
 0x38e   : > { %965 = vmatmul.mubr.msk.bf16.vlgmr.msra.gmra.mrb[0].mxu1 %vm521_vm4, %v727_v61 }
 0x461   : > { %v773_v63 = vpop.f32.mrb[0].mxu1 }
 0x462   : > { %v968_v0 = vadd.f32 %v874_v62, %v773_v63  ;;  %v966_v1 = vpop.f32.mrb[1].mxu1 }
 0x463   : > { %v776_v2 = vpop.f32.mrb[2].mxu1 }
 0x464   : > { %v967_v3 = vpop.f32.mrb[3].mxu1  ;;  %780 = vst.msk [vmem:[%s309_s10] sm:$0xff] %vm400_vm3, %v968_v0 }
 0x465   : > { %1042 = shalt.err (!%p1039_p3)
}
 0x466   : > { %s1043_s22 = scalar_lea.hbm %s1276_s18, 128  ;;  %s1047_s26 = scalar_lea.hbm %s1327_s8, 256 }
 0x467   : > { %p1044_p4 = scmp.ne.s32.totalorder %s1276_s18, %s1043_s22  ;;  %p1048_p9 = scmp.lt.u32.totalorder %s1276_s18, %s1327_s8 }
 0x468   : > { %p1049_p10 = scmp.lt.u32.totalorder %s1047_s26, %s1043_s22  ;;  %p1051_p12 = scmp.lt.u32.totalorder %s1043_s22, %s1276_s18 }
 0x469   : > { %p1045_p7 = pnand %p1044_p4, %p1179_p5 }
 0x46a   : > { %p1050_p11 = por %p1049_p10, %p1048_p9 }
 0x46b   : > { %p1046_p8 = pneg %p1045_p7 }
 0x46c   : > { %p1052_p13 = por %p1051_p12, %p1050_p11 }
 0x46e   : > { %p1053_p0 = pnand %p1052_p13, %p1046_p8 }
 0x470   : > { %1056 = shalt.err (!%p1053_p0)
}
 0x471   : > { %977 = dma.vmem_to_hbm [thread:$0]  (%p1179_p5), %s1278_s12, 128, %s1276_s18, %s782_s9  }
 0x472 PF: > { %p983_p1 = scmp.ge.s32.totalorder %s1091_s30, 2  ;;  %s807_s17 = sand.u32 1, %s1079_s27  }
 0x473   : > { %s808_s19 = scalar_lea.sflag [#allocation3], %s807_s17 }
 0x474   : > { %p980_p2 = pnand %p983_p1, %p1183_p6 }
 0x476   : > { %1074 = dma.done.wait (!%p980_p2), %s808_s19, 128  }
 0x477   : > { %1076 = vsyncadd (!%p980_p2), %s808_s19, 4294967168  ;;  %p18_p3 = scmp.ge.s32.totalorder %s1166_s11, 4   ;;  %s1330_s27 = smov %s1083_s28 }
 0x478   : > { %s1331_s28 = smov %s1087_s29  ;;  %s1332_s29 = smov %s1177_s14 }
 0x479   : > { %s1333_s30 = smov %s1166_s11  ;;  %20 = sbr.rel (!%p18_p3) target bundleno = 3 (0x3), region = 90 }
 0x480   :  { %813 = vsyncpa [#allocation3], 1 }
 0x481   :  { %815 = vsyncpa [#allocation3 + $0x1], 1 }

</bundles_post_ra>
